<compile_context>
chip_gen: v6e
topology: v6e:2x2x1
jax: 0.10.0
libtpu: 0.0.40
codegen_flags: <defaults>
</compile_context>

<pallas_src>
import math
import functools

import jax
import jax.numpy as jnp
from jax.experimental import pallas as pl
from jax.experimental.pallas import tpu as pltpu


def _seq_self_attn_kernel(xq_ref, xk_ref, wt_ref, wx_ref, bh_ref, wa_ref,
                          ba_ref, o_ref, q_sc, acc_sc, den_sc, *,
                          hc, n_chunks, t_valid, needs_mask, score_dtype):
    kt = pl.program_id(2)
    tq = q_sc.shape[0]
    tk = xk_ref.shape[1]

    # ---- per (batch, query-tile) init: project q once, zero accumulators ----
    @pl.when(kt == 0)
    def _init():
        q_sc[...] = jnp.dot(xq_ref[0], wt_ref[...],
                            preferred_element_type=jnp.float32)      # (TQ, H)
        acc_sc[...] = jnp.zeros_like(acc_sc)
        den_sc[...] = jnp.zeros_like(den_sc)

    xk = xk_ref[0]                                                    # (TK, D)

    # ---- additive-attention scores for this (query tile, key tile) ----------
    # Layout (TQ, HC, TK): TK on lanes (lane-dense for TK >= 128), H on
    # sublanes, so q+k -> tanh -> *Wa -> sum-over-H reduces along sublanes and
    # stays aligned with e's (TQ, TK) layout (no cross-lane relayout / spill).
    def score_chunk(q_c, wx_c, bh_c, wa_c):
        # k projection for this H-chunk (recomputed per key tile; MXU time is
        # negligible next to the TQ*TK*HC tanh work on the EUP).
        k_c = jnp.dot(xk, wx_c, preferred_element_type=jnp.float32) + bh_c
        k_ct = k_c.T.astype(score_dtype)                  # (HC, TK)
        q_cs = q_c.astype(score_dtype)                    # (TQ, HC)
        wa_cs = wa_c.astype(score_dtype)                  # (HC, 1)
        h = jnp.tanh(q_cs[:, :, None] + k_ct[None, :, :])    # (TQ, HC, TK)
        contrib = jnp.sum(h * wa_cs[None, :, :], axis=1)     # (TQ, TK)
        return contrib.astype(jnp.float32)

    if n_chunks == 1:
        e = score_chunk(q_sc[...], wx_ref[...], bh_ref[...], wa_ref[...])
    else:
        def body(c, e_acc):
            off = pl.multiple_of(c * hc, hc)
            return e_acc + score_chunk(q_sc[:, pl.ds(off, hc)],
                                       wx_ref[:, pl.ds(off, hc)],
                                       bh_ref[:, pl.ds(off, hc)],
                                       wa_ref[pl.ds(off, hc), :])
        e = jax.lax.fori_loop(0, n_chunks, body,
                              jnp.zeros((tq, tk), jnp.float32), unroll=True)

    e = e + ba_ref[0]

    # sigmoid then online softmax; e in (0,1) after sigmoid => exp is stable
    # without max-subtraction.
    p = jnp.exp(jax.nn.sigmoid(e))                                    # (TQ, TK)

    if needs_mask:
        col = jax.lax.broadcasted_iota(jnp.int32, (1, tk), 1) + kt * tk
        p = jnp.where(col < t_valid, p, 0.0)                # zero padded keys

    acc_sc[...] += jnp.dot(p, xk, preferred_element_type=jnp.float32)   # (TQ, D)
    den_sc[...] += jnp.sum(p, axis=-1, keepdims=True)                   # (TQ, 1)

    # ---- finalize: normalize and emit ---------------------------------------
    @pl.when(kt == pl.num_programs(2) - 1)
    def _done():
        out = acc_sc[...] * pl.reciprocal(den_sc[...], approx=False)
        o_ref[0] = out.astype(o_ref.dtype)


def _tpu_kind():
    try:
        return jax.devices()[0].device_kind.lower()
    except Exception:
        return ""


def _default_score_dtype():
    kind = _tpu_kind()
    if "v6" in kind or "v7" in kind:
        return jnp.bfloat16          # bf16 VPU/EUP available
    return jnp.float32               # v5e and older: no bf16 VPU/EUP


def _default_vmem_limit():
    kind = _tpu_kind()
    if "v7" in kind:
        return 48 * 1024 * 1024      # v7x: 64 MiB physical VMEM per TC
    if "v6" in kind or "v5" in kind:
        return 100 * 1024 * 1024     # v5e/v6e: 128 MiB physical VMEM
    return None                      # unknown generation: keep compiler default


def _round_up(x, m):
    return ((x + m - 1) // m) * m


def _pick_seq_tile(T, tile=128):
    """Query/key tile: lane-dense (128) when T allows, sublane-aligned always."""
    if T <= tile:
        return _round_up(T, 8)
    return tile


def _pick_h_chunk(H, max_hc=128):
    """H-chunk of the 3D score tile; decouples live VMEM from hidden size."""
    if H <= max_hc:
        return H
    if H % max_hc == 0:
        return max_hc
    # TODO(synk): hidden sizes > 128 that are not a multiple of 128 fall back
    # to a single chunk (keeps dynamic lane slices 128-aligned).
    return H


def seq_self_attention(x, Wt, Wx, bh, Wa, ba, *, tile=128, score_dtype=None):
    B, T, D = x.shape
    H = Wt.shape[1]
    if score_dtype is None:
        score_dtype = _default_score_dtype()

    tq = tk = _pick_seq_tile(T, tile)
    Tpad = _round_up(T, tq)
    needs_mask = Tpad != T
    x_in = jnp.pad(x, ((0, 0), (0, Tpad - T), (0, 0))) if needs_mask else x
    nq, nk = Tpad // tq, Tpad // tk

    hc = _pick_h_chunk(H)
    n_chunks = H // hc if H % hc == 0 else 1

    bh2 = bh.reshape(1, H)        # broadcast row, folded into the k projection
    wa2 = Wa.reshape(H, 1)        # column vector for the sublane multiply-reduce
    ba1 = ba.reshape(1,)          # true scalar, lives in SMEM

    kernel = functools.partial(
        _seq_self_attn_kernel, hc=hc, n_chunks=n_chunks, t_valid=T,
        needs_mask=needs_mask, score_dtype=score_dtype)

    cost = pl.CostEstimate(
        flops=int(2 * B * nq * tq * D * H              # q projections
                  + 2 * B * nq * nk * tk * D * H       # k projections
                  + 3 * B * Tpad * Tpad * H            # add + *Wa + reduce
                  + 2 * B * Tpad * Tpad * D),          # p @ x
        transcendentals=int(B * Tpad * Tpad * (H + 3)),  # tanh + sigmoid + exp
        bytes_accessed=int(B * nq * nk * (tq + tk) * D * 4
                           + B * Tpad * D * 4
                           + (2 * D * H + 2 * H) * 4),
    )

    out = pl.pallas_call(
        kernel,
        out_shape=jax.ShapeDtypeStruct((B, Tpad, D), x.dtype),
        grid=(B, nq, nk),
        in_specs=[
            pl.BlockSpec((1, tq, D), lambda b, q, k: (b, q, 0)),   # x: query rows
            pl.BlockSpec((1, tk, D), lambda b, q, k: (b, k, 0)),   # x: key/value rows
            pl.BlockSpec((D, H), lambda b, q, k: (0, 0)),          # Wt (resident)
            pl.BlockSpec((D, H), lambda b, q, k: (0, 0)),          # Wx (resident)
            pl.BlockSpec((1, H), lambda b, q, k: (0, 0)),          # bh (resident)
            pl.BlockSpec((H, 1), lambda b, q, k: (0, 0)),          # Wa (resident)
            pl.BlockSpec(memory_space=pltpu.MemorySpace.SMEM),     # ba (scalar)
        ],
        out_specs=pl.BlockSpec((1, tq, D), lambda b, q, k: (b, q, 0)),
        scratch_shapes=[
            pltpu.VMEM((tq, H), jnp.float32),   # cached q projection
            pltpu.VMEM((tq, D), jnp.float32),   # context accumulator
            pltpu.VMEM((tq, 1), jnp.float32),   # softmax denominator
        ],
        compiler_params=pltpu.CompilerParams(
            dimension_semantics=("parallel", "parallel", "arbitrary"),
            vmem_limit_bytes=_default_vmem_limit()),
        cost_estimate=cost,
    )(x_in, x_in, Wt, Wx, bh2, wa2, ba1)

    return out[:, :T, :] if needs_mask else out


def _reference(x, Wt, Wx, bh, Wa, ba):
    # pure-JAX replica of the PyTorch forward, for verification
    q = (x @ Wt)[:, :, None, :]            # (B, T, 1, H)
    k = (x @ Wx)[:, None, :, :]            # (B, 1, T, H)
    h = jnp.tanh(q + k + bh)               # (B, T, T, H)
    e = jnp.squeeze(h @ Wa, axis=-1) + ba  # (B, T, T)
    s = jax.nn.sigmoid(e)
    a = jax.nn.softmax(s, axis=-1)
    return a @ x


if __name__ == "__main__":
    def glorot(k, fan_in, fan_out):
        std = math.sqrt(2.0 / (fan_in + fan_out))
        return std * jax.random.normal(k, (fan_in, fan_out), dtype=jnp.float32)

    # --- test 1: small shapes consistent with the module spec ----------------
    B, T, D, H = 2, 8, 16, 32
    key = jax.random.PRNGKey(0)
    kx, kwt, kwx, kwa, k2 = jax.random.split(key, 5)
    x = jax.random.normal(kx, (B, T, D), dtype=jnp.float32)
    Wt = glorot(kwt, D, H)
    Wx = glorot(kwx, D, H)
    bh = jnp.zeros((H,), dtype=jnp.float32)
    Wa = glorot(kwa, H, 1)
    ba = jnp.zeros((1,), dtype=jnp.float32)

    ref = _reference(x, Wt, Wx, bh, Wa, ba)

    # f32 score path: tight parity with the PyTorch module
    out_f32 = jax.block_until_ready(
        seq_self_attention(x, Wt, Wx, bh, Wa, ba, score_dtype=jnp.float32))
    assert out_f32.shape == (B, T, D)
    assert jnp.allclose(out_f32, ref, atol=5e-3, rtol=5e-3), "f32 mismatch vs reference"

    # auto score path (bf16 on v6e/v7x, f32 on v5e): perf configuration
    out_auto = jax.block_until_ready(seq_self_attention(x, Wt, Wx, bh, Wa, ba))
    assert jnp.allclose(out_auto, ref, atol=5e-2, rtol=5e-2), "auto mismatch vs reference"

    # --- test 2: exercises tiling, T-padding/masking and H-chunking ----------
    B2, T2, D2, H2 = 1, 200, 128, 256
    kx2, kwt2, kwx2, kwa2 = jax.random.split(k2, 4)
    x2 = jax.random.normal(kx2, (B2, T2, D2), dtype=jnp.float32)
    Wt2 = glorot(kwt2, D2, H2)
    Wx2 = glorot(kwx2, D2, H2)
    bh2_ = jnp.zeros((H2,), dtype=jnp.float32)
    Wa2 = glorot(kwa2, H2, 1)
    ba2_ = jnp.zeros((1,), dtype=jnp.float32)

    ref2 = _reference(x2, Wt2, Wx2, bh2_, Wa2, ba2_)
    out2 = jax.block_until_ready(
        seq_self_attention(x2, Wt2, Wx2, bh2_, Wa2, ba2_))
    assert out2.shape == (B2, T2, D2)
    assert jnp.allclose(out2, ref2, atol=5e-2, rtol=5e-2), "tiled/masked mismatch"

    print("KERNEL_OK")
</pallas_src>

<mosaic_0001>
module attributes {stable_mosaic.version = 11 : i64} {
  func.func @_seq_self_attn_kernel(%arg0: i32, %arg1: i32, %arg2: i32, %arg3: memref<1x8x16xf32, #tpu.memory_space<vmem>>, %arg4: memref<1x8x16xf32, #tpu.memory_space<vmem>>, %arg5: memref<16x32xf32, #tpu.memory_space<vmem>>, %arg6: memref<16x32xf32, #tpu.memory_space<vmem>>, %arg7: memref<1x32xf32, #tpu.memory_space<vmem>>, %arg8: memref<32x1xf32, #tpu.memory_space<vmem>>, %arg9: memref<1xf32, #tpu.memory_space<smem>>, %arg10: memref<1x8x16xf32, #tpu.memory_space<vmem>>, %arg11: memref<8x32xf32, #tpu.memory_space<vmem>>, %arg12: memref<8x16xf32, #tpu.memory_space<vmem>>, %arg13: memref<8x1xf32, #tpu.memory_space<vmem>>) attributes {dimension_semantics = [#tpu.dimension_semantics<parallel>, #tpu.dimension_semantics<parallel>, #tpu.dimension_semantics<arbitrary>], iteration_bounds = array<i64: 2, 1, 1>, scalar_prefetch = 0 : i64, scratch_operands = 3 : i64, tpu.core_type = #tpu.core_type<tc>, window_params = [{transform_indices = @transform_0, window_bounds = array<i64: 1, 8, 16>}, {transform_indices = @transform_1, window_bounds = array<i64: 1, 8, 16>}, {pipeline_mode = #tpu.pipeline_mode<synchronous>, transform_indices = @transform_2, window_bounds = array<i64: 16, 32>}, {pipeline_mode = #tpu.pipeline_mode<synchronous>, transform_indices = @transform_3, window_bounds = array<i64: 16, 32>}, {pipeline_mode = #tpu.pipeline_mode<synchronous>, transform_indices = @transform_4, window_bounds = array<i64: 1, 32>}, {pipeline_mode = #tpu.pipeline_mode<synchronous>, transform_indices = @transform_5, window_bounds = array<i64: 32, 1>}, {transform_indices = @transform_6, window_bounds = array<i64: 1>}, {transform_indices = @transform_7, window_bounds = array<i64: 1, 8, 16>}]} {
    %c0_i32 = arith.constant 0 : i32
    %0 = arith.cmpi eq, %arg2, %c0_i32 : i32
    %1 = arith.extui %0 : i1 to i32
    %c0_i32_0 = arith.constant 0 : i32
    %2 = arith.cmpi ne, %1, %c0_i32_0 : i32
    scf.if %2 {
      %c0_26 = arith.constant 0 : index
      %c0_27 = arith.constant 0 : index
      %c0_28 = arith.constant 0 : index
      %44 = vector.load %arg3[%c0_26, %c0_27, %c0_28] : memref<1x8x16xf32, #tpu.memory_space<vmem>>, vector<1x8x16xf32>
      %45 = vector.shape_cast %44 : vector<1x8x16xf32> to vector<8x16xf32>
      %c0_29 = arith.constant 0 : index
      %c0_30 = arith.constant 0 : index
      %46 = vector.load %arg5[%c0_29, %c0_30] : memref<16x32xf32, #tpu.memory_space<vmem>>, vector<16x32xf32>
      %cst_31 = arith.constant dense<0.000000e+00> : vector<8x32xf32>
      %47 = tpu.matmul %45, %46, %cst_31 {dimension_numbers = #tpu.dot_dimension_numbers<[1], [0], [0], [1], [0, 0, 1, 1], [], []>} : vector<8x16xf32>, vector<16x32xf32>, vector<8x32xf32> -> vector<8x32xf32>
      %c0_32 = arith.constant 0 : index
      %c0_33 = arith.constant 0 : index
      %48 = vector.load %arg11[%c0_32, %c0_33] : memref<8x32xf32, #tpu.memory_space<vmem>>, vector<8x32xf32>
      tpu.vector_store %arg11[%c0_32, %c0_33], %47 {strides = array<i32>} : memref<8x32xf32, #tpu.memory_space<vmem>>, vector<8x32xf32>,
      %cst_34 = arith.constant 0.000000e+00 : f32
      %49 = vector.broadcast %cst_34 : f32 to vector<8x16xf32>
      %c0_35 = arith.constant 0 : index
      %c0_36 = arith.constant 0 : index
      %50 = vector.load %arg12[%c0_35, %c0_36] : memref<8x16xf32, #tpu.memory_space<vmem>>, vector<8x16xf32>
      tpu.vector_store %arg12[%c0_35, %c0_36], %49 {strides = array<i32>} : memref<8x16xf32, #tpu.memory_space<vmem>>, vector<8x16xf32>,
      %cst_37 = arith.constant 0.000000e+00 : f32
      %51 = vector.broadcast %cst_37 : f32 to vector<8x1xf32>
      %c0_38 = arith.constant 0 : index
      %c0_39 = arith.constant 0 : index
      %52 = vector.load %arg13[%c0_38, %c0_39] : memref<8x1xf32, #tpu.memory_space<vmem>>, vector<8x1xf32>
      tpu.vector_store %arg13[%c0_38, %c0_39], %51 {strides = array<i32>} : memref<8x1xf32, #tpu.memory_space<vmem>>, vector<8x1xf32>,
    } else {
    }
    %c0 = arith.constant 0 : index
    %c0_1 = arith.constant 0 : index
    %c0_2 = arith.constant 0 : index
    %3 = vector.load %arg4[%c0, %c0_1, %c0_2] : memref<1x8x16xf32, #tpu.memory_space<vmem>>, vector<1x8x16xf32>
    %4 = vector.shape_cast %3 : vector<1x8x16xf32> to vector<8x16xf32>
    %c0_3 = arith.constant 0 : index
    %c0_4 = arith.constant 0 : index
    %5 = vector.load %arg11[%c0_3, %c0_4] : memref<8x32xf32, #tpu.memory_space<vmem>>, vector<8x32xf32>
    %c0_5 = arith.constant 0 : index
    %c0_6 = arith.constant 0 : index
    %6 = vector.load %arg6[%c0_5, %c0_6] : memref<16x32xf32, #tpu.memory_space<vmem>>, vector<16x32xf32>
    %c0_7 = arith.constant 0 : index
    %c0_8 = arith.constant 0 : index
    %7 = vector.load %arg7[%c0_7, %c0_8] : memref<1x32xf32, #tpu.memory_space<vmem>>, vector<1x32xf32>
    %c0_9 = arith.constant 0 : index
    %c0_10 = arith.constant 0 : index
    %8 = vector.load %arg8[%c0_9, %c0_10] : memref<32x1xf32, #tpu.memory_space<vmem>>, vector<32x1xf32>
    %cst = arith.constant dense<0.000000e+00> : vector<8x32xf32>
    %9 = tpu.matmul %4, %6, %cst {dimension_numbers = #tpu.dot_dimension_numbers<[1], [0], [0], [1], [0, 0, 1, 1], [], []>} : vector<8x16xf32>, vector<16x32xf32>, vector<8x32xf32> -> vector<8x32xf32>
    %10 = vector.broadcast %7 : vector<1x32xf32> to vector<8x32xf32>
    %11 = arith.addf %9, %10 : vector<8x32xf32>
    %12 = tpu.transpose %11, [1, 0] : vector<8x32xf32> -> vector<32x8xf32>
    %13 = vector.shape_cast %5 : vector<8x32xf32> to vector<8x32x1xf32>
    %14 = vector.shape_cast %12 : vector<32x8xf32> to vector<1x32x8xf32>
    %15 = vector.broadcast %13 : vector<8x32x1xf32> to vector<8x32x8xf32>
    %16 = vector.broadcast %14 : vector<1x32x8xf32> to vector<8x32x8xf32>
    %17 = arith.addf %15, %16 : vector<8x32x8xf32>
    %18 = math.tanh %17 : vector<8x32x8xf32>
    %19 = vector.shape_cast %8 : vector<32x1xf32> to vector<1x32x1xf32>
    %20 = vector.broadcast %19 : vector<1x32x1xf32> to vector<8x32x8xf32>
    %21 = arith.mulf %18, %20 : vector<8x32x8xf32>
    %cst_11 = arith.constant dense<0.000000e+00> : vector<8x8xf32>
    %22 = vector.multi_reduction <add>, %21, %cst_11 [1] : vector<8x32x8xf32> to vector<8x8xf32>
    %c0_12 = arith.constant 0 : index
    %23 = memref.load %arg9[%c0_12] : memref<1xf32, #tpu.memory_space<smem>>
    %24 = vector.broadcast %23 : f32 to vector<8x8xf32>
    %25 = arith.addf %22, %24 : vector<8x8xf32>
    %26 = arith.negf %25 : vector<8x8xf32>
    %27 = math.exp %26 : vector<8x8xf32>
    %cst_13 = arith.constant 1.000000e+00 : f32
    %28 = vector.broadcast %cst_13 : f32 to vector<8x8xf32>
    %29 = arith.addf %28, %27 : vector<8x8xf32>
    %30 = arith.divf %28, %29 : vector<8x8xf32>
    %31 = math.exp %30 : vector<8x8xf32>
    %c0_14 = arith.constant 0 : index
    %c0_15 = arith.constant 0 : index
    %32 = vector.load %arg12[%c0_14, %c0_15] : memref<8x16xf32, #tpu.memory_space<vmem>>, vector<8x16xf32>
    %cst_16 = arith.constant dense<0.000000e+00> : vector<8x16xf32>
    %33 = tpu.matmul %31, %4, %cst_16 {dimension_numbers = #tpu.dot_dimension_numbers<[1], [0], [0], [1], [0, 0, 1, 1], [], []>} : vector<8x8xf32>, vector<8x16xf32>, vector<8x16xf32> -> vector<8x16xf32>
    %34 = arith.addf %32, %33 : vector<8x16xf32>
    %c0_17 = arith.constant 0 : index
    %c0_18 = arith.constant 0 : index
    %35 = vector.load %arg12[%c0_17, %c0_18] : memref<8x16xf32, #tpu.memory_space<vmem>>, vector<8x16xf32>
    tpu.vector_store %arg12[%c0_17, %c0_18], %34 {strides = array<i32>} : memref<8x16xf32, #tpu.memory_space<vmem>>, vector<8x16xf32>,
    %c0_19 = arith.constant 0 : index
    %c0_20 = arith.constant 0 : index
    %36 = vector.load %arg13[%c0_19, %c0_20] : memref<8x1xf32, #tpu.memory_space<vmem>>, vector<8x1xf32>
    %cst_21 = arith.constant dense<0.000000e+00> : vector<8xf32>
    %37 = vector.multi_reduction <add>, %31, %cst_21 [1] : vector<8x8xf32> to vector<8xf32>
    %38 = vector.shape_cast %37 : vector<8xf32> to vector<8x1xf32>
    %39 = arith.addf %36, %38 : vector<8x1xf32>
    %c0_22 = arith.constant 0 : index
    %c0_23 = arith.constant 0 : index
    %40 = vector.load %arg13[%c0_22, %c0_23] : memref<8x1xf32, #tpu.memory_space<vmem>>, vector<8x1xf32>
    tpu.vector_store %arg13[%c0_22, %c0_23], %39 {strides = array<i32>} : memref<8x1xf32, #tpu.memory_space<vmem>>, vector<8x1xf32>,
    %c0_i32_24 = arith.constant 0 : i32
    %41 = arith.cmpi eq, %arg2, %c0_i32_24 : i32
    %42 = arith.extui %41 : i1 to i32
    %c0_i32_25 = arith.constant 0 : i32
    %43 = arith.cmpi ne, %42, %c0_i32_25 : i32
    scf.if %43 {
      %c0_26 = arith.constant 0 : index
      %c0_27 = arith.constant 0 : index
      %44 = vector.load %arg12[%c0_26, %c0_27] : memref<8x16xf32, #tpu.memory_space<vmem>>, vector<8x16xf32>
      %c0_28 = arith.constant 0 : index
      %c0_29 = arith.constant 0 : index
      %45 = vector.load %arg13[%c0_28, %c0_29] : memref<8x1xf32, #tpu.memory_space<vmem>>, vector<8x1xf32>
      %46 = tpu.reciprocal %45 : vector<8x1xf32> -> vector<8x1xf32>
      %47 = vector.broadcast %46 : vector<8x1xf32> to vector<8x16xf32>
      %48 = arith.mulf %44, %47 : vector<8x16xf32>
      %c0_30 = arith.constant 0 : index
      %c0_31 = arith.constant 0 : index
      %c0_32 = arith.constant 0 : index
      %49 = vector.load %arg10[%c0_30, %c0_31, %c0_32] : memref<1x8x16xf32, #tpu.memory_space<vmem>>, vector<1x8x16xf32>
      %50 = vector.shape_cast %49 : vector<1x8x16xf32> to vector<8x16xf32>
      %51 = vector.shape_cast %48 : vector<8x16xf32> to vector<1x8x16xf32>
      tpu.vector_store %arg10[%c0_30, %c0_31, %c0_32], %51 {strides = array<i32>} : memref<1x8x16xf32, #tpu.memory_space<vmem>>, vector<1x8x16xf32>,
    } else {
    }
    return
  }
  func.func @transform_0(%arg0: i32, %arg1: i32, %arg2: i32) -> (i32, i32, i32) {
    %c0_i32 = arith.constant 0 : i32
    %c0_i32_0 = arith.constant 0 : i32
    return %arg0, %arg1, %c0_i32 : i32, i32, i32
  }
  func.func @transform_1(%arg0: i32, %arg1: i32, %arg2: i32) -> (i32, i32, i32) {
    %c0_i32 = arith.constant 0 : i32
    %c0_i32_0 = arith.constant 0 : i32
    return %arg0, %arg2, %c0_i32 : i32, i32, i32
  }
  func.func @transform_2(%arg0: i32, %arg1: i32, %arg2: i32) -> (i32, i32) {
    %c0_i32 = arith.constant 0 : i32
    %c0_i32_0 = arith.constant 0 : i32
    %c0_i32_1 = arith.constant 0 : i32
    return %c0_i32, %c0_i32_0 : i32, i32
  }
  func.func @transform_3(%arg0: i32, %arg1: i32, %arg2: i32) -> (i32, i32) {
    %c0_i32 = arith.constant 0 : i32
    %c0_i32_0 = arith.constant 0 : i32
    %c0_i32_1 = arith.constant 0 : i32
    return %c0_i32, %c0_i32_0 : i32, i32
  }
  func.func @transform_4(%arg0: i32, %arg1: i32, %arg2: i32) -> (i32, i32) {
    %c0_i32 = arith.constant 0 : i32
    %c0_i32_0 = arith.constant 0 : i32
    %c0_i32_1 = arith.constant 0 : i32
    return %c0_i32, %c0_i32_0 : i32, i32
  }
  func.func @transform_5(%arg0: i32, %arg1: i32, %arg2: i32) -> (i32, i32) {
    %c0_i32 = arith.constant 0 : i32
    %c0_i32_0 = arith.constant 0 : i32
    %c0_i32_1 = arith.constant 0 : i32
    return %c0_i32, %c0_i32_0 : i32, i32
  }
  func.func @transform_6(%arg0: i32, %arg1: i32, %arg2: i32) -> i32 {
    %c0_i32 = arith.constant 0 : i32
    %c0_i32_0 = arith.constant 0 : i32
    return %c0_i32 : i32
  }
  func.func @transform_7(%arg0: i32, %arg1: i32, %arg2: i32) -> (i32, i32, i32) {
    %c0_i32 = arith.constant 0 : i32
    %c0_i32_0 = arith.constant 0 : i32
    return %arg0, %arg1, %c0_i32 : i32, i32, i32
  }
}

</mosaic_0001>

<bundles_post_ra>
// kernel: tpu_custom_call.1
= control target key start
LH: loop header
LB: loop body
LE: loop exit
PB: predicated region body
PF: predicated region fallthrough
CT: control target
= control target key end

     0   :  { %s1985_s0 = inlined_call_operand.vmem [shape: f32[2,8,16], index: 0, kind: input, shape index: {}]   ;;  %s1986_s1 = inlined_call_operand.vmem [shape: f32[2,8,16], index: 1, kind: input, shape index: {}]   ;;  %s1987_s2 = inlined_call_operand.hbm [shape: f32[16,32], index: 2, kind: input, shape index: {}]   ;;  %s1988_s3 = inlined_call_operand.hbm [shape: f32[16,32], index: 3, kind: input, shape index: {}]   ;;  %s1989_s4 = inlined_call_operand.vmem [shape: f32[1,32], index: 4, kind: input, shape index: {}]   ;;  %s1990_s5 = inlined_call_operand.vmem [shape: f32[32,1], index: 5, kind: input, shape index: {}]   ;;  %s1991_s6 = inlined_call_operand.<no memory space> [shape: f32[1], index: 6, kind: input, shape index: {}]   ;;  %s1992_s7 = inlined_call_operand.hbm [shape: f32[2,8,16], index: 7, kind: output, shape index: {}]  }
   0x1   :  { %12 = sst [smem:[#allocation5]] %s1991_s6 }
   0x2   :  { %13 = vsyncpa [#allocation7], 0 }
   0x3   :  { %14 = vsyncpa [#allocation10], 0 }
   0x4   :  { %15 = vsyncpa [#allocation8], 0 }
   0x5   :  { %17 = vsyncpa [#allocation8 + $0x1], 0  ;;  %s1704_s26 = smov 0   ;;  %s1706_s27 = smov 0  }
   0x6   :  { %s1708_s28 = smov 0   ;;  %s1710_s29 = smov 0  }
   0x7   :  { %s1712_s30 = smov 0   ;;  %s1714_s8 = smov 0  }
   0x8 LB: > { %s1263_s6 = sadd.s32 4294967295, %s1651_s8   ;;  %s1264_s9 = sadd.s32 4294967294, %s1651_s8   ;;  %s1651_s8 = sphi %s1714_s8, %s23_s8   ;;  %s1647_s30 = sphi %s1712_s30, %s2005_s30   ;;  %s1643_s29 = sphi %s1710_s29, %s2004_s29   ;;  %s1639_s28 = sphi %s1708_s28, %s2003_s28   ;;  %s1635_s27 = sphi %s1706_s27, %s2002_s27   ;;  %s1631_s26 = sphi %s1704_s26, %s2001_s26  }
   0x9   : > { %s42_s10 = sadd.s32 1, %s1647_s30  ;;  %s212_s11 = sadd.s32 1, %s1639_s28 }
   0xa   : > { %p44_p0 = scmp.ge.s32.totalorder %s42_s10, 2  ;;  %p222_p1 = scmp.ne.s32.totalorder %s1639_s28, %s1635_s27 }
   0xb   : > { %p223_p2 = scmp.eq.s32.totalorder %s1263_s6, 1  ;;  %p228_p3 = scmp.ne.s32.totalorder %s1635_s27, %s1631_s26 }
   0xc   : > { %s2007_s10 = smov (%p44_p0, %s42_s10), 0  ;;  %p229_p5 = scmp.eq.s32.totalorder %s1264_s9, 1 }
   0xd   : > { %p1744_p4 = por %p223_p2, %p222_p1  ;;  %s207_s13 = ssub.s32 %s1647_s30, %s2007_s10 }
   0xe   : > { %p1265_p6 = scmp.ge.s32.totalorder %s1651_s8, 1  ;;  %p210_p7 = scmp.eq.s32.totalorder %s207_s13, 0 }
   0xf   : > { %s1994_s12 = scalar_select %p1744_p4, 1, 0 }
  0x10   : > { %p1751_p8 = por %p229_p5, %p228_p3  ;;  %p236_p9 = scmp.lt.s32.totalorder %s1651_s8, 3 }
  0x11   : > { %s1757_s15 = scalar_select %p210_p7, %s1639_s28, %s212_s11  }
  0x12   : > { %s1995_s14 = scalar_select %p1751_p8, 1, 0 }
  0x13   : > { %p1759_p10 = pnand %p1265_p6, %p236_p9  ;;  %p1763_p11 = scmp.eq.s32.totalorder %s1263_s6, 0 }
  0x14   : > { %s1653_s18 = smov [#allocation6]   ;;  %s1654_s21 = smov [#allocation9]  }
  0x15   : > { %p1328_p12 = pneg %p1759_p10  ;;  %s248_s19 = sshll.u32 %s1653_s18, 4  ;;  %s249_s19 = int_to_ptr.vmem [resolvable:$true] %s248_s19 }
  0x16   : > { %s261_s22 = sshll.u32 %s1654_s21, 4  ;;  %s1526_s23 = scalar_lea.vmem %s249_s19, 256  ;;  %s262_s22 = int_to_ptr.vmem [resolvable:$true] %s261_s22 }
  0x17   : > { %p1771_p13 = pnand %p1763_p11, %p1328_p12  ;;  %p1527_p1 = scmp.ne.s32.totalorder %s249_s19, %s1526_s23 }
  0x18   : > { %p1534_p5 = scmp.lt.s32.totalorder %s249_s19, %s249_s19  ;;  %p1535_p6 = scmp.lt.s32.totalorder %s1526_s23, %s1526_s23 }
  0x19   : > { %p1517_p0 = pneg %p1771_p13 }
  0x1a   : > { %p1536_p7 = por %p1535_p6, %p1534_p5 }
  0x1b   : > { %p1529_p2 = pnand %p1527_p1, %p1517_p0 }
  0x1d   : > { %p1530_p3 = pneg %p1529_p2 }
  0x1f   : > { %p1537_p9 = pnand %p1536_p7, %p1530_p3 }
  0x21   : > { %1540 = shalt.err (!%p1537_p9)
}
  0x22   : > { %s1655_s24 = smov 128   ;;  %s1656_s25 = smov 8  }
  0x23   : > { %1331 = dma.hbm_to_vmem [thread:$0]  (!%p1771_p13), %s1987_s2, 256, %s249_s19, [#allocation7], %s1655_s24, %s1655_s24, %s1656_s25  }
  0x24   : > { %s1552_s11 = scalar_lea.vmem %s262_s22, 256  ;;  %p1560_p8 = scmp.lt.s32.totalorder %s262_s22, %s262_s22 }
  0x25   : > { %p1553_p12 = scmp.ne.s32.totalorder %s262_s22, %s1552_s11  ;;  %p1561_p4 = scmp.lt.s32.totalorder %s1552_s11, %s1552_s11 }
  0x27   : > { %p1555_p1 = pnand %p1553_p12, %p1517_p0  ;;  %p1562_p5 = por %p1561_p4, %p1560_p8 }
  0x29   : > { %p1556_p2 = pneg %p1555_p1 }
  0x2b   : > { %p1563_p3 = pnand %p1562_p5, %p1556_p2 }
  0x2d   : > { %1566 = shalt.err (!%p1563_p3)
}
  0x2e   : > { %1334 = dma.hbm_to_vmem [thread:$0]  (!%p1771_p13), %s1988_s3, 256, %s262_s22, [#allocation10], %s1655_s24, %s1655_s24, %s1656_s25  }
  0x2f   : > { %306 = sbr.rel (%p1759_p10) target bundleno = 918 (0x396), region = 48 }
  0x34   : > { %1618 = dma.done.wait (%p1763_p11), [#allocation7], 256  }
  0x35   : > { %1620 = vsyncadd (%p1763_p11), [#allocation7], 4294967040 }
  0x36   : > { %1622 = dma.done.wait (%p1763_p11), [#allocation10], 256  }
  0x37   : > { %1624 = vsyncadd (%p1763_p11), [#allocation10], 4294967040  ;;  %p351_p4 = scmp.lt.s32.totalorder %s1643_s29, 1  ;;  %vm372_vm0 = vcmask 130048   ;;  %v1657_v0 = vmov 0.0   ;;  %vm1658_vm1 = vmmov 0   ;;  %v572_v8 = vlaneseq }
  0x38   : > { %1299 = vmatprep.subr.mxu0 %v1657_v0  ;;  %1303 = vmatprep.mubr.msk.f32.mxu0 %vm1658_vm1, %v1657_v0  ;;  %448 = vst.msk [vmem:[#allocation3] sm:$0xff] %vm372_vm0, %v1657_v0  ;;  %v371_v1 = vld [vmem:[#allocation6 + $0x8] sm:$0xff]  ;;  %v370_v2 = vld [vmem:[#allocation6] sm:$0xff]  ;;  %v454_v4 = vld [vmem:[#allocation9 + $0x8] sm:$0xff]  ;;  %v1659_v7 = vmov 0   ;;  %vm446_vm2 = vcmask 261120  }
  0x39   : > { %s352_s16 = scalar_select %p351_p4, %s1643_s29, 1  ;;  %1306 = vmatprep.subr.mxu1 %v1657_v0  ;;  %1310 = vmatprep.mubr.msk.f32.mxu1 %vm1658_vm1, %v1657_v0  ;;  %v453_v5 = vld [vmem:[#allocation9] sm:$0xff]  ;;  %v573_v10 = vshrl.u32 %v572_v8, 7  ;;  %v458_v32 = vld [vmem:[%s1990_s5 + $0x10] sm:$0xff]  ;;  %v456_v33 = vld [vmem:[%s1990_s5] sm:$0xff]  ;;  %vm449_vm3 = vcmask 7168  }
  0x3a   : > { %1300 = vmatpush3.msra.mxu0 %v371_v1  ;;  %1307 = vmatpush3.msra.mxu1 %v454_v4  ;;  %v457_v31 = vld [vmem:[%s1990_s5 + $0x8] sm:$0xff]  ;;  %v459_v34 = vld [vmem:[%s1990_s5 + $0x18] sm:$0xff]  ;;  %v1276_v35 = vld [vmem:[%s1989_s4] ss:$0 sm:$0xff]  ;;  %450 = vst.msk [vmem:[#allocation4] sm:$0xff] %vm449_vm3, %v1657_v0  ;;  %vm840_vm4 = vcmask 64512  }
  0x3b   : > { %s1273_s17 = sshll.u32 %s352_s16, 3  ;;  %1301 = vmatprep.subr.mxu0 %v1657_v0  ;;  %1308 = vmatprep.subr.mxu1 %v1657_v0  ;;  %v593_v14 = vsub.s32 1, %v573_v10  ;;  %v574_v15 = vsub.s32 0, %v573_v10  ;;  %v612_v19 = vsub.s32 2, %v573_v10  ;;  %v631_v21 = vsub.s32 3, %v573_v10  ;;  %s348_s22 = sand.u32 1, %s1635_s27  }
  0x3c   : > { %s357_s21 = scalar_lea.vmem %s1985_s0, %s1273_s17  ;;  %s364_s24 = scalar_lea.vmem %s1986_s1, %s1273_s17  ;;  %1302 = vmatpush3.msra.mxu0 %v370_v2  ;;  %1309 = vmatpush3.msra.mxu1 %v453_v5  ;;  %v650_v23 = vsub.s32 4, %v573_v10  ;;  %v669_v25 = vsub.s32 5, %v573_v10  ;;  %v688_v27 = vsub.s32 6, %v573_v10  ;;  %v707_v29 = vsub.s32 7, %v573_v10 }
  0x3d   : > { %v369_v3 = vld [vmem:[%s357_s21] sm:$0xff]  ;;  %1313 = vmatprep.subr.mxu0 %v1657_v0  ;;  %1400 = vset.pattern.permute.xlu1 %v1659_v7  ;;  %s945_s21 = sld [smem:[#allocation5]]  ;;  %vm1028_vm5 = vcmask 1041409   ;;  %vm1030_vm6 = vcmask 1042434   ;;  %vm1032_vm7 = vcmask 1043459   ;;  %vm1034_vm8 = vcmask 1044484  }
  0x3e   : > { %v451_v6 = vld [vmem:[%s364_s24] sm:$0xff]  ;;  %1304 = vmatmul.mubr.msk.f32.vlgmr.msra.gmra.mxu0 %vm372_vm0, %v369_v3  ;;  %1399 = vset.pattern.permute.xlu0 %v1659_v7  ;;  %vm1036_vm9 = vcmask 1045509   ;;  %vm1038_vm10 = vcmask 1046534   ;;  %vm1040_vm11 = vcmask 1047559   ;;  %s1272_s23 = sshll.u32 %s348_s22, 3  ;;  %s1288_s24 = sshll.u32 %s1643_s29, 7 }
  0x3f   : > { %1311 = vmatmul.mubr.msk.f32.vlgmr.msra.gmra.mxu1 %vm372_vm0, %v451_v6  ;;  %1314 = vmatpush3.msra.mxu0 %v451_v6  ;;  %s350_s25 = scalar_lea.vmem [#allocation11], %s1272_s23  ;;  %s1150_s13 = scalar_lea.hbm %s1992_s7, %s1288_s24 }
  0x40   : > { %1315 = vmatprep.mubr.msk.f32.mxu0 %vm1658_vm1, %v1657_v0  ;;  %s1152_s6 = sshll.u32 %s350_s25, 4  ;;  %s1138_s18 = scalar_lea.sflag [#allocation8], %s348_s22  ;;  %s1153_s6 = int_to_ptr.vmem [resolvable:$true] %s1152_s6 }
  0x41   : > { %s1567_s16 = scalar_lea.vmem %s1153_s6, 128  ;;  %p1999_p10 = scmp.ne.s32.totalorder %s1994_s12, 0 }
  0x42   : > { %p1568_p8 = scmp.ne.s32.totalorder %s1153_s6, %s1567_s16  ;;  %s1660_s17 = smov [#allocation11]  }
  0x43   : > { %s1571_s29 = sshll.u32 %s1660_s17, 4  ;;  %s1572_s29 = int_to_ptr.vmem [resolvable:$false] %s1571_s29 }
  0x44   : > { %p1569_p11 = pnand %p1568_p8, %p1999_p10  ;;  %s1573_s19 = scalar_lea.vmem %s1572_s29, 256 }
  0x45   : > { %p1574_p0 = scmp.lt.s32.totalorder %s1153_s6, %s1572_s29  ;;  %p1575_p6 = scmp.lt.s32.totalorder %s1573_s19, %s1567_s16 }
  0x46   : > { %p1570_p13 = pneg %p1569_p11 }
  0x47   : > { %p1576_p7 = por %p1575_p6, %p1574_p0 }
  0x49   : > { %p1577_p9 = pnand %p1576_p7, %p1570_p13 }
  0xfe   : > { %v442_v9 = vpop.f32.mrf.mxu0 }
  0xff   : > { %447 = vst.msk [vmem:[#allocation2] sm:$0xff] %vm446_vm2, %v442_v9  ;;  %v536_v11 = vpop.f32.mrf.mxu1 }
 0x100   : > { %v1305_v12 = vpop.f32.mrf.mxu0  ;;  %v537_v36 = vadd.f32 %v1276_v35, %v536_v11 }
 0x101   : > { %v1312_v13 = vpop.f32.mrf.mxu1 }
 0x106   : > { %v452_v16 = vld [vmem:[#allocation2] sm:$0xff] }
 0x107   : > { %v594_v17 = vrot.slane %v452_v16, %v593_v14  ;;  %v575_v18 = vrot.slane %v452_v16, %v574_v15  ;;  %v613_v20 = vrot.slane %v452_v16, %v612_v19  ;;  %v632_v22 = vrot.slane %v452_v16, %v631_v21 }
 0x108   : > { %v651_v24 = vrot.slane %v452_v16, %v650_v23  ;;  %v670_v26 = vrot.slane %v452_v16, %v669_v25  ;;  %v689_v28 = vrot.slane %v452_v16, %v688_v27  ;;  %v708_v30 = vrot.slane %v452_v16, %v707_v29 }
 0x109   : > { %596 = vbcast.lane.b32.xlu1 %v594_v17, 256  ;;  %577 = vbcast.lane.b32.xlu0 %v575_v18, 256 }
 0x10d   : > { %600 = vbcast.lane.b32.xlu1 %v594_v17, 264  ;;  %581 = vbcast.lane.b32.xlu0 %v575_v18, 264 }
 0x111   : > { %619 = vbcast.lane.b32.xlu1 %v613_v20, 264  ;;  %615 = vbcast.lane.b32.xlu0 %v613_v20, 256 }
 0x115   : > { %604 = vbcast.lane.b32.xlu1 %v594_v17, 272  ;;  %585 = vbcast.lane.b32.xlu0 %v575_v18, 272 }
 0x119   : > { %638 = vbcast.lane.b32.xlu1 %v632_v22, 264  ;;  %634 = vbcast.lane.b32.xlu0 %v632_v22, 256 }
 0x11d   : > { %653 = vbcast.lane.b32.xlu1 %v651_v24, 256  ;;  %623 = vbcast.lane.b32.xlu0 %v613_v20, 272 }
 0x121   : > { %589 = vbcast.lane.b32.xlu1 %v575_v18, 280  ;;  %657 = vbcast.lane.b32.xlu0 %v651_v24, 264 }
 0x125   : > { %642 = vbcast.lane.b32.xlu1 %v632_v22, 272  ;;  %608 = vbcast.lane.b32.xlu0 %v594_v17, 280 }
 0x129   : > { %676 = vbcast.lane.b32.xlu1 %v670_v26, 264  ;;  %672 = vbcast.lane.b32.xlu0 %v670_v26, 256 }
 0x12d   : > { %661 = vbcast.lane.b32.xlu1 %v651_v24, 272  ;;  %627 = vbcast.lane.b32.xlu0 %v613_v20, 280 }
 0x131   : > { %695 = vbcast.lane.b32.xlu1 %v689_v28, 264  ;;  %691 = vbcast.lane.b32.xlu0 %v689_v28, 256 }
 0x135   : > { %680 = vbcast.lane.b32.xlu1 %v670_v26, 272  ;;  %646 = vbcast.lane.b32.xlu0 %v632_v22, 280 }
 0x139   : > { %714 = vbcast.lane.b32.xlu1 %v708_v30, 264  ;;  %710 = vbcast.lane.b32.xlu0 %v708_v30, 256 }
 0x13d   : > { %699 = vbcast.lane.b32.xlu1 %v689_v28, 272  ;;  %665 = vbcast.lane.b32.xlu0 %v651_v24, 280 }
 0x141   : > { %718 = vbcast.lane.b32.xlu1 %v708_v30, 272  ;;  %684 = vbcast.lane.b32.xlu0 %v670_v26, 280 }
 0x145   : > { %795 = vperm.xlu1 %1400, %v457_v31   ;;  %703 = vbcast.lane.b32.xlu0 %v689_v28, 280 }
 0x149   : > { %800 = vperm.xlu1 %1400, %v458_v32   ;;  %790 = vperm.xlu0 %1399, %v456_v33  }
 0x14d   : > { %722 = vbcast.lane.b32.xlu1 %v708_v30, 280  ;;  %805 = vperm.xlu0 %1399, %v459_v34  }
 0x176   : > { %540 = vxpose.xlu1.b32.start.end [1/1] (short) (narrow) %v537_v36, 32 }
 0x17b   : > { %v597_v37 = vpop.permute.xlu1 %596  ;;  %v578_v42 = vpop.permute.xlu0 %577 }
 0x17f   : > { %v601_v38 = vpop.permute.xlu1 %600  ;;  %v582_v44 = vpop.permute.xlu0 %581 }
 0x183   : > { %v620_v39 = vpop.permute.xlu1 %619  ;;  %v616_v46 = vpop.permute.xlu0 %615 }
 0x187   : > { %v1841_v40 = vpop.permute.xlu1 %604  ;;  %v586_v48 = vpop.permute.xlu0 %585 }
 0x18b   : > { %v639_v41 = vpop.permute.xlu1 %638  ;;  %v635_v50 = vpop.permute.xlu0 %634 }
 0x18f   : > { %v654_v43 = vpop.permute.xlu1 %653  ;;  %v624_v52 = vpop.permute.xlu0 %623 }
 0x193   : > { %v1843_v45 = vpop.permute.xlu1 %589  ;;  %v658_v54 = vpop.permute.xlu0 %657 }
 0x197   : > { %v1845_v47 = vpop.permute.xlu1 %642  ;;  %v1851_v56 = vpop.permute.xlu0 %608 }
 0x19b   : > { %v677_v49 = vpop.permute.xlu1 %676  ;;  %v673_v58 = vpop.permute.xlu0 %672 }
 0x19f   : > { %v1847_v51 = vpop.permute.xlu1 %661  ;;  %v1855_v60 = vpop.permute.xlu0 %627 }
 0x1a3   : > { %v696_v53 = vpop.permute.xlu1 %695  ;;  %v692_v63 = vpop.permute.xlu0 %691 }
 0x1a7   : > { %v1849_v55 = vpop.permute.xlu1 %680  ;;  %v1863_v2 = vpop.permute.xlu0 %646 }
 0x1ab   : > { %v715_v57 = vpop.permute.xlu1 %714  ;;  %v711_v4 = vpop.permute.xlu0 %710 }
 0x1af   : > { %v1853_v59 = vpop.permute.xlu1 %699  ;;  %v1869_v10 = vpop.permute.xlu0 %665 }
 0x1b3   : > { %v1857_v61 = vpop.permute.xlu1 %718  ;;  %v685_v17 = vpop.permute.xlu0 %684 }
 0x1b7   : > { %v704_v25 = vpop.permute.xlu0 %703 }
 0x1c0   : > { %v1859_v62 = vpop.permute.xlu1 %795 }
 0x1c4   : > { %v1861_v1 = vpop.permute.xlu1 %800  ;;  %v791_v36 = vpop.permute.xlu0 %790 }
 0x1c8   : > { %v1867_v3 = vpop.permute.xlu1 %722 }
 0x1f2   : > { %v556_v5 = vpop.trf.xlu1 }
 0x1f3   : > { %v724_v6 = vadd.f32 %v578_v42, %v556_v5  ;;  %v728_v7 = vadd.f32 %v597_v37, %v556_v5  ;;  %v732_v8 = vadd.f32 %v616_v46, %v556_v5  ;;  %v736_v9 = vadd.f32 %v635_v50, %v556_v5 }
 0x1f4   : > { %v740_v11 = vadd.f32 %v654_v43, %v556_v5  ;;  %v744_v12 = vadd.f32 %v673_v58, %v556_v5  ;;  %v748_v14 = vadd.f32 %v692_v63, %v556_v5  ;;  %v752_v15 = vadd.f32 %v711_v4, %v556_v5 }
 0x1f5   : > { %1401 = vtanh.f32 %v724_v6 }
 0x1f6   : > { %1403 = vtanh.f32 %v728_v7  ;;  %v557_v13 = vpop.trf.xlu1 }
 0x1f7   : > { %1405 = vtanh.f32 %v732_v8  ;;  %v725_v0 = vadd.f32 %v582_v44, %v557_v13  ;;  %v729_v16 = vadd.f32 %v601_v38, %v557_v13  ;;  %v733_v18 = vadd.f32 %v620_v39, %v557_v13 }
 0x1f8   : > { %1407 = vtanh.f32 %v736_v9  ;;  %v737_v19 = vadd.f32 %v639_v41, %v557_v13  ;;  %v741_v20 = vadd.f32 %v658_v54, %v557_v13  ;;  %v745_v21 = vadd.f32 %v677_v49, %v557_v13 }
 0x1f9   : > { %1409 = vtanh.f32 %v740_v11  ;;  %v749_v23 = vadd.f32 %v696_v53, %v557_v13  ;;  %v753_v24 = vadd.f32 %v715_v57, %v557_v13  ;;  %v1876_v41 = vstv %s945_s21 }
 0x1fa   : > { %1411 = vtanh.f32 %v744_v12  ;;  %v558_v22 = vpop.trf.xlu1 }
 0x1fb   : > { %1413 = vtanh.f32 %v748_v14  ;;  %v726_v26 = vadd.f32 %v586_v48, %v558_v22  ;;  %v730_v28 = vadd.f32 %v1841_v40, %v558_v22  ;;  %v734_v30 = vadd.f32 %v624_v52, %v558_v22 }
 0x1fc   : > { %1415 = vtanh.f32 %v752_v15  ;;  %v738_v32 = vadd.f32 %v1845_v47, %v558_v22  ;;  %v742_v34 = vadd.f32 %v1847_v51, %v558_v22  ;;  %v746_v38 = vadd.f32 %v1849_v55, %v558_v22 }
 0x1fd   : > { %1417 = vtanh.f32 %v725_v0  ;;  %v750_v40 = vadd.f32 %v1853_v59, %v558_v22  ;;  %v754_v43 = vadd.f32 %v1857_v61, %v558_v22 }
 0x1fe   : > { %1419 = vtanh.f32 %v729_v16  ;;  %v559_v35 = vpop.trf.xlu1 }
 0x1ff   : > { %1421 = vtanh.f32 %v733_v18  ;;  %v727_v44 = vadd.f32 %v1843_v45, %v559_v35  ;;  %v731_v48 = vadd.f32 %v1851_v56, %v559_v35  ;;  %v735_v49 = vadd.f32 %v1855_v60, %v559_v35 }
 0x200   : > { %1423 = vtanh.f32 %v737_v19  ;;  %v739_v52 = vadd.f32 %v1863_v2, %v559_v35  ;;  %v743_v53 = vadd.f32 %v1869_v10, %v559_v35  ;;  %v747_v57 = vadd.f32 %v685_v17, %v559_v35 }
 0x201   : > { %1425 = vtanh.f32 %v741_v20  ;;  %v751_v58 = vadd.f32 %v704_v25, %v559_v35  ;;  %v755_v61 = vadd.f32 %v1867_v3, %v559_v35 }
 0x202   : > { %v1402_v27 = vpop.eup %1401  ;;  %1427 = vtanh.f32 %v745_v21 }
 0x203   : > { %v1404_v29 = vpop.eup %1403  ;;  %1429 = vtanh.f32 %v749_v23  ;;  %v808_v46 = vmul.f32 %v1402_v27, %v791_v36 }
 0x204   : > { %v1406_v31 = vpop.eup %1405  ;;  %1431 = vtanh.f32 %v753_v24  ;;  %v812_v50 = vmul.f32 %v1404_v29, %v791_v36 }
 0x205   : > { %v1408_v33 = vpop.eup %1407  ;;  %1433 = vtanh.f32 %v726_v26  ;;  %v816_v54 = vmul.f32 %v1406_v31, %v791_v36  ;;  %v841_v60 = vsel %vm840_vm4, %v808_v46, 0.0 }
 0x206   : > { %v1410_v37 = vpop.eup %1409  ;;  %1435 = vtanh.f32 %v730_v28  ;;  %v820_v45 = vmul.f32 %v1408_v33, %v791_v36  ;;  %v854_v2 = vsel %vm840_vm4, %v812_v50, 0.0 }
 0x207   : > { %v1412_v39 = vpop.eup %1411  ;;  %1437 = vtanh.f32 %v734_v30  ;;  %v824_v56 = vmul.f32 %v1410_v37, %v791_v36  ;;  %v867_v9 = vsel %vm840_vm4, %v816_v54, 0.0 }
 0x208   : > { %v1414_v42 = vpop.eup %1413  ;;  %1439 = vtanh.f32 %v738_v32  ;;  %v828_v4 = vmul.f32 %v1412_v39, %v791_v36  ;;  %v880_v12 = vsel %vm840_vm4, %v820_v45, 0.0 }
 0x209   : > { %v1416_v47 = vpop.eup %1415  ;;  %1441 = vtanh.f32 %v742_v34  ;;  %v832_v5 = vmul.f32 %v1414_v42, %v791_v36  ;;  %v893_v0 = vsel %vm840_vm4, %v824_v56, 0.0 }
 0x20a   : > { %v1418_v51 = vpop.eup %1417  ;;  %1443 = vtanh.f32 %v746_v38  ;;  %v836_v15 = vmul.f32 %v1416_v47, %v791_v36  ;;  %v906_v18 = vsel %vm840_vm4, %v828_v4, 0.0 }
 0x20b   : > { %v1420_v55 = vpop.eup %1419  ;;  %1445 = vtanh.f32 %v750_v40  ;;  %v809_v7 = vmul.f32 %v1418_v51, %v1859_v62  ;;  %v919_v19 = vsel %vm840_vm4, %v832_v5, 0.0 }
 0x20c   : > { %v1422_v59 = vpop.eup %1421  ;;  %1447 = vtanh.f32 %v754_v43  ;;  %v813_v8 = vmul.f32 %v1420_v55, %v1859_v62  ;;  %v932_v35 = vsel %vm840_vm4, %v836_v15, 0.0 }
 0x20d   : > { %v1424_v63 = vpop.eup %1423  ;;  %1449 = vtanh.f32 %v727_v44  ;;  %v817_v3 = vmul.f32 %v1422_v59, %v1859_v62  ;;  %v842_v22 = vsel %vm840_vm4, %v809_v7, 0.0 }
 0x20e   : > { %v1426_v6 = vpop.eup %1425  ;;  %1451 = vtanh.f32 %v731_v48  ;;  %v821_v11 = vmul.f32 %v1424_v63, %v1859_v62  ;;  %v855_v23 = vsel %vm840_vm4, %v813_v8, 0.0  ;;  %v843_v34 = vadd.f32 %v842_v22, %v841_v60  ;;  %v806_v63 = vpop.permute.xlu0 %805 }
 0x20f   : > { %v1428_v10 = vpop.eup %1427  ;;  %1453 = vtanh.f32 %v735_v49  ;;  %v825_v14 = vmul.f32 %v1426_v6, %v1859_v62  ;;  %v868_v26 = vsel %vm840_vm4, %v817_v3, 0.0  ;;  %v856_v38 = vadd.f32 %v855_v23, %v854_v2 }
 0x210   : > { %v1430_v13 = vpop.eup %1429  ;;  %1455 = vtanh.f32 %v739_v52  ;;  %v829_v17 = vmul.f32 %v1428_v10, %v1859_v62  ;;  %v881_v27 = vsel %vm840_vm4, %v821_v11, 0.0  ;;  %v869_v39 = vadd.f32 %v868_v26, %v867_v9 }
 0x211   : > { %v1432_v16 = vpop.eup %1431  ;;  %1457 = vtanh.f32 %v743_v53  ;;  %v833_v21 = vmul.f32 %v1430_v13, %v1859_v62  ;;  %v894_v29 = vsel %vm840_vm4, %v825_v14, 0.0  ;;  %v882_v44 = vadd.f32 %v881_v27, %v880_v12 }
 0x212   : > { %v1434_v20 = vpop.eup %1433  ;;  %1459 = vtanh.f32 %v747_v57  ;;  %v837_v25 = vmul.f32 %v1432_v16, %v1859_v62  ;;  %v907_v33 = vsel %vm840_vm4, %v829_v17, 0.0  ;;  %v895_v46 = vadd.f32 %v894_v29, %v893_v0 }
 0x213   : > { %v1436_v24 = vpop.eup %1435  ;;  %1461 = vtanh.f32 %v751_v58  ;;  %v810_v30 = vmul.f32 %v1434_v20, %v1861_v1  ;;  %v920_v37 = vsel %vm840_vm4, %v833_v21, 0.0  ;;  %v908_v49 = vadd.f32 %v907_v33, %v906_v18 }
 0x214   : > { %v1438_v28 = vpop.eup %1437  ;;  %1463 = vtanh.f32 %v755_v61  ;;  %v814_v31 = vmul.f32 %v1436_v24, %v1861_v1  ;;  %v933_v43 = vsel %vm840_vm4, %v837_v25, 0.0  ;;  %v921_v54 = vadd.f32 %v920_v37, %v919_v19 }
 0x215   : > { %v1440_v32 = vpop.eup %1439  ;;  %v818_v62 = vmul.f32 %v1438_v28, %v1861_v1  ;;  %v844_v51 = vsel %vm840_vm4, %v810_v30, 0.0  ;;  %v934_v59 = vadd.f32 %v933_v43, %v932_v35 }
 0x216   : > { %v1442_v36 = vpop.eup %1441  ;;  %v822_v40 = vmul.f32 %v1440_v32, %v1861_v1  ;;  %v857_v52 = vsel %vm840_vm4, %v814_v31, 0.0  ;;  %v845_v5 = vadd.f32 %v844_v51, %v843_v34 }
 0x217   : > { %v1444_v42 = vpop.eup %1443  ;;  %v826_v47 = vmul.f32 %v1442_v36, %v1861_v1  ;;  %v870_v57 = vsel %vm840_vm4, %v818_v62, 0.0  ;;  %v858_v2 = vadd.f32 %v857_v52, %v856_v38 }
 0x218   : > { %v1446_v48 = vpop.eup %1445  ;;  %v830_v50 = vmul.f32 %v1444_v42, %v1861_v1  ;;  %v883_v58 = vsel %vm840_vm4, %v822_v40, 0.0  ;;  %v871_v9 = vadd.f32 %v870_v57, %v869_v39 }
 0x219   : > { %v1448_v53 = vpop.eup %1447  ;;  %v834_v55 = vmul.f32 %v1446_v48, %v1861_v1  ;;  %v896_v56 = vsel %vm840_vm4, %v826_v47, 0.0  ;;  %v884_v10 = vadd.f32 %v883_v58, %v882_v44 }
 0x21a   : > { %v1450_v45 = vpop.eup %1449  ;;  %v838_v61 = vmul.f32 %v1448_v53, %v1861_v1  ;;  %v909_v60 = vsel %vm840_vm4, %v830_v50, 0.0  ;;  %v897_v13 = vadd.f32 %v896_v56, %v895_v46 }
 0x21b   : > { %v1452_v4 = vpop.eup %1451  ;;  %v922_v6 = vsel %vm840_vm4, %v834_v55, 0.0  ;;  %v811_v7 = vmul.f32 %v1450_v45, %v806_v63  ;;  %v910_v1 = vadd.f32 %v909_v60, %v908_v49 }
 0x21c   : > { %v1454_v8 = vpop.eup %1453  ;;  %v935_v3 = vsel %vm840_vm4, %v838_v61, 0.0  ;;  %v815_v11 = vmul.f32 %v1452_v4, %v806_v63  ;;  %v923_v16 = vadd.f32 %v922_v6, %v921_v54 }
 0x21d   : > { %v1456_v12 = vpop.eup %1455  ;;  %v819_v14 = vmul.f32 %v1454_v8, %v806_v63  ;;  %v846_v15 = vsel %vm840_vm4, %v811_v7, 0.0  ;;  %v936_v21 = vadd.f32 %v935_v3, %v934_v59 }
 0x21e   : > { %v1458_v0 = vpop.eup %1457  ;;  %v823_v17 = vmul.f32 %v1456_v12, %v806_v63  ;;  %v847_v18 = vadd.f32 %v846_v15, %v845_v5  ;;  %v859_v19 = vsel %vm840_vm4, %v815_v11, 0.0 }
 0x21f   : > { %v1460_v20 = vpop.eup %1459  ;;  %v827_v22 = vmul.f32 %v1458_v0, %v806_v63  ;;  %v860_v23 = vadd.f32 %v859_v19, %v858_v2  ;;  %v872_v24 = vsel %vm840_vm4, %v819_v14, 0.0 }
 0x220   : > { %v1462_v25 = vpop.eup %1461  ;;  %v831_v26 = vmul.f32 %v1460_v20, %v806_v63  ;;  %v848_v27 = vrot.slane %v847_v18, 4  ;;  %v873_v28 = vadd.f32 %v872_v24, %v871_v9  ;;  %v885_v29 = vsel %vm840_vm4, %v823_v17, 0.0 }
 0x221   : > { %v1464_v30 = vpop.eup %1463  ;;  %v835_v31 = vmul.f32 %v1462_v25, %v806_v63  ;;  %v861_v32 = vrot.slane %v860_v23, 4  ;;  %v886_v33 = vadd.f32 %v885_v29, %v884_v10  ;;  %v898_v34 = vsel %vm840_vm4, %v827_v22, 0.0 }
 0x222   : > { %v839_v35 = vmul.f32 %v1464_v30, %v806_v63  ;;  %v849_v62 = vadd.f32 %v848_v27, %v847_v18  ;;  %v874_v36 = vrot.slane %v873_v28, 4  ;;  %v899_v37 = vadd.f32 %v898_v34, %v897_v13 }
 0x223   : > { %v862_v38 = vadd.f32 %v861_v32, %v860_v23  ;;  %v887_v39 = vrot.slane %v886_v33, 4  ;;  %v911_v40 = vsel %vm840_vm4, %v831_v26, 0.0  ;;  %v924_v42 = vsel %vm840_vm4, %v835_v31, 0.0 }
 0x224   : > { %v850_v43 = vrot.slane %v849_v62, 2  ;;  %v875_v44 = vadd.f32 %v874_v36, %v873_v28  ;;  %v900_v46 = vrot.slane %v899_v37, 4  ;;  %v912_v47 = vadd.f32 %v911_v40, %v910_v1 }
 0x225   : > { %v863_v48 = vrot.slane %v862_v38, 2  ;;  %v888_v49 = vadd.f32 %v887_v39, %v886_v33  ;;  %v925_v50 = vadd.f32 %v924_v42, %v923_v16  ;;  %v937_v51 = vsel %vm840_vm4, %v839_v35, 0.0 }
 0x226   : > { %v851_v52 = vadd.f32 %v850_v43, %v849_v62  ;;  %v876_v53 = vrot.slane %v875_v44, 2  ;;  %v901_v54 = vadd.f32 %v900_v46, %v899_v37  ;;  %v913_v55 = vrot.slane %v912_v47, 4 }
 0x227   : > { %v864_v57 = vadd.f32 %v863_v48, %v862_v38  ;;  %v889_v58 = vrot.slane %v888_v49, 2  ;;  %v926_v45 = vrot.slane %v925_v50, 4  ;;  %v938_v59 = vadd.f32 %v937_v51, %v936_v21 }
 0x228   : > { %v852_v61 = vrot.slane %v851_v52, 1  ;;  %v877_v56 = vadd.f32 %v876_v53, %v875_v44  ;;  %v902_v60 = vrot.slane %v901_v54, 2  ;;  %v914_v63 = vadd.f32 %v913_v55, %v912_v47 }
 0x229   : > { %v865_v4 = vrot.slane %v864_v57, 1  ;;  %v890_v5 = vadd.f32 %v889_v58, %v888_v49  ;;  %v927_v2 = vadd.f32 %v926_v45, %v925_v50  ;;  %v939_v6 = vrot.slane %v938_v59, 4 }
 0x22a   : > { %v853_v7 = vadd.f32 %v852_v61, %v851_v52  ;;  %v878_v8 = vrot.slane %v877_v56, 1  ;;  %v903_v9 = vadd.f32 %v902_v60, %v901_v54  ;;  %v915_v10 = vrot.slane %v914_v63, 2 }
 0x22b   : > { %v866_v3 = vadd.f32 %v865_v4, %v864_v57  ;;  %v891_v11 = vrot.slane %v890_v5, 1  ;;  %v928_v12 = vrot.slane %v927_v2, 2  ;;  %v940_v13 = vadd.f32 %v939_v6, %v938_v59 }
 0x22c   : > { %v879_v1 = vadd.f32 %v878_v8, %v877_v56  ;;  %v904_v14 = vrot.slane %v903_v9, 1  ;;  %v916_v15 = vadd.f32 %v915_v10, %v914_v63  ;;  %v947_v0 = vadd.f32 %v1876_v41, %v853_v7 }
 0x22d   : > { %v892_v16 = vadd.f32 %v891_v11, %v890_v5  ;;  %v929_v17 = vadd.f32 %v928_v12, %v927_v2  ;;  %v941_v18 = vrot.slane %v940_v13, 2  ;;  %v948_v19 = vadd.f32 %v1876_v41, %v866_v3 }
 0x22e   : > { %v905_v20 = vadd.f32 %v904_v14, %v903_v9  ;;  %v917_v21 = vrot.slane %v916_v15, 1  ;;  %v949_v22 = vadd.f32 %v1876_v41, %v879_v1  ;;  %v1278_v23 = vmul.f32 -1.442695, %v947_v0 }
 0x22f   : > { %v930_v24 = vrot.slane %v929_v17, 1  ;;  %v942_v25 = vadd.f32 %v941_v18, %v940_v13  ;;  %v950_v26 = vadd.f32 %v1876_v41, %v892_v16  ;;  %v1279_v27 = vmul.f32 -1.442695, %v948_v19 }
 0x230   : > { %v918_v28 = vadd.f32 %v917_v21, %v916_v15  ;;  %v951_v29 = vadd.f32 %v1876_v41, %v905_v20  ;;  %1465 = vpow2.f32 %v1278_v23  ;;  %v1280_v30 = vmul.f32 -1.442695, %v949_v22 }
 0x231   : > { %v931_v31 = vadd.f32 %v930_v24, %v929_v17  ;;  %v943_v32 = vrot.slane %v942_v25, 1  ;;  %1467 = vpow2.f32 %v1279_v27  ;;  %v1281_v33 = vmul.f32 -1.442695, %v950_v26  ;;  %v1116_v26 = vld [vmem:[#allocation4] sm:$0xff] }
 0x232   : > { %v952_v34 = vadd.f32 %v1876_v41, %v918_v28  ;;  %1469 = vpow2.f32 %v1280_v30  ;;  %v1282_v35 = vmul.f32 -1.442695, %v951_v29 }
 0x233   : > { %v944_v62 = vadd.f32 %v943_v32, %v942_v25  ;;  %v953_v36 = vadd.f32 %v1876_v41, %v931_v31  ;;  %1471 = vpow2.f32 %v1281_v33  ;;  %v1019_v31 = vld [vmem:[#allocation3] sm:$0xff] }
 0x234   : > { %1473 = vpow2.f32 %v1282_v35  ;;  %v1283_v37 = vmul.f32 -1.442695, %v952_v34 }
 0x235   : > { %v954_v38 = vadd.f32 %v1876_v41, %v944_v62  ;;  %v1284_v39 = vmul.f32 -1.442695, %v953_v36 }
 0x236   : > { %1475 = vpow2.f32 %v1283_v37 }
 0x237   : > { %1477 = vpow2.f32 %v1284_v39  ;;  %v1285_v40 = vmul.f32 -1.442695, %v954_v38 }
 0x239   : > { %1479 = vpow2.f32 %v1285_v40 }
 0x23d   : > { %v1466_v42 = vpop.eup %1465 }
 0x23e   : > { %v1468_v43 = vpop.eup %1467  ;;  %v979_v44 = vadd.f32 1.0, %v1466_v42 }
 0x23f   : > { %v1470_v46 = vpop.eup %1469  ;;  %v980_v47 = vadd.f32 1.0, %v1468_v43 }
 0x240   : > { %v1472_v48 = vpop.eup %1471  ;;  %v981_v49 = vadd.f32 1.0, %v1470_v46  ;;  %1481 = vrcp.f32 %v979_v44 }
 0x241   : > { %v1474_v50 = vpop.eup %1473  ;;  %v982_v51 = vadd.f32 1.0, %v1472_v48  ;;  %1483 = vrcp.f32 %v980_v47 }
 0x242   : > { %v983_v52 = vadd.f32 1.0, %v1474_v50  ;;  %1485 = vrcp.f32 %v981_v49 }
 0x243   : > { %v1476_v53 = vpop.eup %1475  ;;  %1487 = vrcp.f32 %v982_v51 }
 0x244   : > { %v1478_v41 = vpop.eup %1477  ;;  %v984_v54 = vadd.f32 1.0, %v1476_v53  ;;  %1489 = vrcp.f32 %v983_v52 }
 0x245   : > { %v985_v55 = vadd.f32 1.0, %v1478_v41 }
 0x246   : > { %v1480_v57 = vpop.eup %1479  ;;  %1491 = vrcp.f32 %v984_v54 }
 0x247   : > { %v986_v58 = vadd.f32 1.0, %v1480_v57  ;;  %1493 = vrcp.f32 %v985_v55 }
 0x249   : > { %1495 = vrcp.f32 %v986_v58 }
 0x24d   : > { %v1482_v45 = vpop.eup %1481 }
 0x24e   : > { %v1484_v59 = vpop.eup %1483  ;;  %v1003_v61 = vmul.f32 1.442695, %v1482_v45 }
 0x24f   : > { %v1486_v56 = vpop.eup %1485  ;;  %v1005_v60 = vmul.f32 1.442695, %v1484_v59 }
 0x250   : > { %v1488_v63 = vpop.eup %1487  ;;  %1497 = vpow2.f32 %v1003_v61  ;;  %v1007_v4 = vmul.f32 1.442695, %v1486_v56 }
 0x251   : > { %v1490_v5 = vpop.eup %1489  ;;  %1499 = vpow2.f32 %v1005_v60  ;;  %v1009_v2 = vmul.f32 1.442695, %v1488_v63 }
 0x252   : > { %1501 = vpow2.f32 %v1007_v4  ;;  %v1011_v6 = vmul.f32 1.442695, %v1490_v5 }
 0x253   : > { %v1492_v7 = vpop.eup %1491  ;;  %1503 = vpow2.f32 %v1009_v2 }
 0x254   : > { %v1494_v8 = vpop.eup %1493  ;;  %1505 = vpow2.f32 %v1011_v6  ;;  %v1013_v9 = vmul.f32 1.442695, %v1492_v7 }
 0x255   : > { %v1015_v10 = vmul.f32 1.442695, %v1494_v8 }
 0x256   : > { %v1496_v3 = vpop.eup %1495  ;;  %1507 = vpow2.f32 %v1013_v9 }
 0x257   : > { %1509 = vpow2.f32 %v1015_v10  ;;  %v1017_v11 = vmul.f32 1.442695, %v1496_v3 }
 0x259   : > { %1511 = vpow2.f32 %v1017_v11 }
 0x25d   : > { %v1498_v12 = vpop.eup %1497 }
 0x25e   : > { %v1500_v13 = vpop.eup %1499 }
 0x25f   : > { %v1502_v1 = vpop.eup %1501  ;;  %v1029_v14 = vsel %vm1028_vm5, %v1500_v13, %v1498_v12 }
 0x260   : > { %v1504_v15 = vpop.eup %1503  ;;  %v1031_v0 = vsel %vm1030_vm6, %v1502_v1, %v1029_v14 }
 0x261   : > { %v1506_v16 = vpop.eup %1505  ;;  %v1033_v17 = vsel %vm1032_vm7, %v1504_v15, %v1031_v0 }
 0x262   : > { %v1035_v18 = vsel %vm1034_vm8, %v1506_v16, %v1033_v17 }
 0x263   : > { %v1508_v19 = vpop.eup %1507 }
 0x264   : > { %v1510_v20 = vpop.eup %1509  ;;  %v1037_v21 = vsel %vm1036_vm9, %v1508_v19, %v1035_v18 }
 0x265   : > { %v1039_v22 = vsel %vm1038_vm10, %v1510_v20, %v1037_v21 }
 0x266   : > { %v1512_v23 = vpop.eup %1511 }
 0x267   : > { %v1041_v24 = vsel %vm1040_vm11, %v1512_v23, %v1039_v22 }
 0x268   : > { %1316 = vmatmul.mubr.msk.f32.vlgmr.msra.gmra.mxu0 %vm840_vm4, %v1041_v24  ;;  %v1118_v25 = vsel %vm840_vm4, %v1041_v24, 0.0 }
 0x269   : > { %1119 = vadd.xlane.f32.xlu0 %v1118_v25 }
 0x2f2   : > { %v1120_v27 = vpop.xlane.xlu0 %1119 }
 0x2f3   : > { %v1121_v28 = vadd.f32 %v1120_v27, %v1116_v26 }
 0x2f5   : > { %1123 = vst.msk [vmem:[#allocation4] sm:$0xff] %vm449_vm3, %v1121_v28 }
 0x2fc   : > { %v1128_v29 = vld [vmem:[#allocation4] sm:$0xff] }
 0x2fd   : > { %1513 = vrcp.f32 %v1128_v29 }
 0x30a   : > { %v1514_v30 = vpop.eup %1513 }
 0x30b   : > { %1132 = vperm.xlu0 %1399, %v1514_v30  }
 0x328   : > { %v1110_v32 = vpop.f32.mrf.mxu0 }
 0x329   : > { %v1114_v33 = vadd.f32 %v1110_v32, %v1019_v31 }
 0x32a   : > { %v1317_v34 = vpop.f32.mrf.mxu0 }
 0x32b   : > { %1115 = vst.msk [vmem:[#allocation3] sm:$0xff] %vm372_vm0, %v1114_v33 }
 0x332   : > { %v1127_v62 = vld [vmem:[#allocation3] sm:$0xff] }
 0x386   : > { %v1133_v35 = vpop.permute.xlu0 %1132 }
 0x387   : > { %v1135_v36 = vmul.f32 %v1133_v35, %v1127_v62 }
 0x389   : > { %1136 = vst.msk [vmem:[%s350_s25] sm:$0xff] %vm372_vm0, %v1135_v36 }
 0x38a   : > { %1580 = shalt.err (!%p1577_p9)
}
 0x38b   : > { %s1581_s20 = scalar_lea.hbm %s1150_s13, 128  ;;  %s1585_s23 = scalar_lea.hbm %s1992_s7, 256 }
 0x38c   : > { %p1582_p12 = scmp.ne.s32.totalorder %s1150_s13, %s1581_s20  ;;  %p1586_p5 = scmp.lt.s32.totalorder %s1150_s13, %s1992_s7 }
 0x38d   : > { %p1587_p3 = scmp.lt.s32.totalorder %s1585_s23, %s1581_s20 }
 0x38e   : > { %p1583_p1 = pnand %p1582_p12, %p1999_p10 }
 0x38f   : > { %p1588_p4 = por %p1587_p3, %p1586_p5 }
 0x390   : > { %p1584_p2 = pneg %p1583_p1 }
 0x392   : > { %p1589_p8 = pnand %p1588_p4, %p1584_p2 }
 0x394   : > { %1592 = shalt.err (!%p1589_p8)
}
 0x395   : > { %1326 = dma.vmem_to_hbm [thread:$0]  (%p1999_p10), %s1153_s6, 128, %s1150_s13, %s1138_s18  }
 0x396 PF: > { %p1343_p11 = scmp.ge.s32.totalorder %s1651_s8, 2  ;;  %s1164_s9 = sand.u32 1, %s1631_s26  }
 0x397   : > { %p2000_p13 = scmp.ne.s32.totalorder %s1995_s14, 0  ;;  %s1165_s11 = scalar_lea.sflag [#allocation8], %s1164_s9 }
 0x399   : > { %p1336_p0 = pnand %p1343_p11, %p2000_p13 }
 0x39b   : > { %p1337_p6 = pneg %p1336_p0 }
 0x39d   : > { %1626 = dma.done.wait (%p1337_p6), %s1165_s11, 128  }
 0x39e   : > { %1628 = vsyncadd (%p1337_p6), %s1165_s11, 4294967168  ;;  %s23_s8 = sadd.s32 1, %s1651_s8   ;;  %s2001_s26 = smov %s1635_s27 }
 0x39f   : > { %p20_p7 = scmp.ge.s32.totalorder %s23_s8, 4   ;;  %s2002_s27 = smov %s1639_s28 }
 0x3a0   : > { %s2003_s28 = smov %s1757_s15  ;;  %s2004_s29 = smov %s1647_s30 }
 0x3a1   : > { %s2005_s30 = smov %s2007_s10  ;;  %22 = sbr.rel (!%p20_p7) target bundleno = 8 (0x8), region = 103 }
 0x3a6   :  { %1170 = vsyncpa [#allocation7], 1 }
 0x3a7   :  { %1172 = vsyncpa [#allocation7 + $0x1], 1 }
 0x3a8   :  { %1173 = vsyncpa [#allocation10], 1 }
 0x3a9   :  { %1174 = vsyncpa [#allocation8], 1 }
 0x3aa   :  { %1176 = vsyncpa [#allocation8 + $0x1], 1 }

</bundles_post_ra>
